<compile_context>
chip_gen: v7x
topology: tpu7x:2x2x1
jax: 0.10.0
libtpu: 0.0.40
codegen_flags: <defaults>
</compile_context>

<pallas_src>
import functools

import jax
import jax.numpy as jnp
from jax.experimental import pallas as pl
from jax.experimental.pallas import tpu as pltpu


def _round_up(n, m):
    return ((n + m - 1) // m) * m


def _mgradnet_kernel(x_ref, w1t_ref, bsc_ref, w2_ref, bias_ref, out_ref,
                     *, n_sub, sub_rows, compute_dtype):
    cd = compute_dtype
    w1t = w1t_ref[...].astype(cd)        # (D, ME_pad)   pre-scaled by softplus(beta)
    w2 = w2_ref[...].astype(cd)          # (ME_pad, D)   pre-scaled by softplus(alpha)
    me_pad = w2_ref.shape[0]
    d = w2_ref.shape[1]

    # Hoisted broadcasts (JAX does not CSE broadcast_in_dim inside loops).
    bsc = jnp.broadcast_to(bsc_ref[...], (sub_rows, me_pad))   # b * softplus(beta)
    bias = jnp.broadcast_to(bias_ref[...], (sub_rows, d))

    # Independent row sub-chunks: matmul-2 of chunk j overlaps with the
    # tanh (EUP) and matmul-1 (MXU) of chunk j+1 in the scheduler.
    for j in range(n_sub):
        lo = j * sub_rows
        xs = x_ref[lo:lo + sub_rows, :].astype(cd)             # (sub, D)
        s = jnp.dot(xs, w1t, preferred_element_type=jnp.float32)   # (sub, ME_pad)
        h = jnp.tanh(s + bsc)
        z = jnp.dot(h.astype(cd), w2, preferred_element_type=jnp.float32)  # (sub, D)
        out_ref[lo:lo + sub_rows, :] = (z + bias).astype(out_ref.dtype)


def mgradnet_m_forward(x, W, b, beta, alpha, bias, *,
                       batch_tile=2048, use_bf16=False):
    """x: (B, D); W: (M, E, D); b: (M, E); beta, alpha: (M,); bias: (D,)."""
    f32 = jnp.float32
    M, E, D = W.shape
    B = x.shape[0]
    ME = M * E
    ME_pad = max(128, _round_up(ME, 128))      # lane-dense intermediate width

    x = x.astype(f32)
    W = W.astype(f32)
    b = b.astype(f32)
    beta = beta.astype(f32)
    alpha = alpha.astype(f32)
    bias = bias.astype(f32)

    # Fold the per-module softplus scales into the weights (one-time, O(ME*D)):
    #   tanh((x@W^T + b) * spb) == tanh(x @ (W*spb)^T + b*spb)
    #   spa * (h @ W)           == h @ (W*spa)
    spb_rows = jnp.repeat(jax.nn.softplus(beta), E)    # (ME,)
    spa_rows = jnp.repeat(jax.nn.softplus(alpha), E)   # (ME,)
    W_flat = W.reshape(ME, D)
    W1 = jnp.pad(W_flat * spb_rows[:, None], ((0, ME_pad - ME), (0, 0)))
    W2 = jnp.pad(W_flat * spa_rows[:, None], ((0, ME_pad - ME), (0, 0)))
    W1T = W1.T                                          # (D, ME_pad), no in-kernel transpose
    b_scaled = jnp.pad(b.reshape(ME) * spb_rows,
                       (0, ME_pad - ME)).reshape(1, ME_pad)
    bias2d = bias.reshape(1, D)

    if use_bf16:
        # Largest MXU win on v6e/v7x; loosen reference tolerance to ~1e-2.
        W1T = W1T.astype(jnp.bfloat16)
        W2 = W2.astype(jnp.bfloat16)
        compute_dtype = jnp.bfloat16
    else:
        compute_dtype = f32

    # Batch tiling: sublane-align B; for large batches prefer >= 2 grid steps
    # so the "parallel" axis can shard across v7x's two TensorCores.
    B_pad = _round_up(B, 8)
    tb_cap = min(batch_tile, max(8, _round_up(pl.cdiv(B_pad, 2), 8)))
    TB = min(tb_cap, B_pad)
    B_pad = _round_up(B_pad, TB)
    n_tiles = B_pad // TB

    x_p = jnp.pad(x, ((0, B_pad - B), (0, 0))) if B_pad != B else x

    # In-body sub-chunking of the batch tile (MXU/EUP overlap, bounded live
    # ranges of the (rows, ME_pad) f32 intermediates).
    n_sub = 1
    for cand in (4, 2):
        if TB % (cand * 8) == 0 and TB // cand >= 256:
            n_sub = cand
            break
    sub_rows = TB // n_sub

    kernel = functools.partial(_mgradnet_kernel, n_sub=n_sub,
                               sub_rows=sub_rows, compute_dtype=compute_dtype)

    out = pl.pallas_call(
        kernel,
        out_shape=jax.ShapeDtypeStruct((B_pad, D), f32),
        grid_spec=pltpu.PrefetchScalarGridSpec(
            num_scalar_prefetch=0,
            grid=(n_tiles,),
            in_specs=[
                pl.BlockSpec((TB, D), lambda i: (i, 0)),       # x tile
                pl.BlockSpec((D, ME_pad), lambda i: (0, 0)),   # W1^T (spb-scaled)
                pl.BlockSpec((1, ME_pad), lambda i: (0, 0)),   # b * softplus(beta)
                pl.BlockSpec((ME_pad, D), lambda i: (0, 0)),   # W2 (spa-scaled)
                pl.BlockSpec((1, D), lambda i: (0, 0)),        # final bias
            ],
            out_specs=pl.BlockSpec((TB, D), lambda i: (i, 0)),
        ),
        compiler_params=pltpu.CompilerParams(
            dimension_semantics=("parallel",),
            vmem_limit_bytes=32 * 1024 * 1024),
    )(x_p, W1T, b_scaled, W2, bias2d)

    return out[:B] if B_pad != B else out


def mgradnet_m_reference(x, W, b, beta, alpha, bias):
    """Plain-JAX reference matching the PyTorch forward."""
    z = 0.0
    for i in range(W.shape[0]):
        h = x @ W[i].T + b[i]
        h = jnp.tanh(h * jax.nn.softplus(beta[i]))
        z = z + jax.nn.softplus(alpha[i]) * (h @ W[i])
    return z + bias


if __name__ == "__main__":
    # Small shapes consistent with the module: batch=4, in_dim=16, embed_dim=32
    num_modules, in_dim, embed_dim, batch = 3, 16, 32, 4

    key = jax.random.PRNGKey(0)
    kW, kb, kbeta, kalpha, kbias, kx = jax.random.split(key, 6)

    # Deterministic init mirroring init_W / init_b / torch.rand
    k_in = (1.0 / in_dim) ** 0.5
    k_emb = (1.0 / embed_dim) ** 0.5
    W = jax.random.uniform(kW, (num_modules, embed_dim, in_dim),
                           minval=-k_in, maxval=k_in, dtype=jnp.float32)
    b = jax.random.uniform(kb, (num_modules, embed_dim),
                           minval=-k_in, maxval=k_in, dtype=jnp.float32)
    beta = jax.random.uniform(kbeta, (num_modules,), dtype=jnp.float32)
    alpha = jax.random.uniform(kalpha, (num_modules,), dtype=jnp.float32)
    bias = jax.random.uniform(kbias, (in_dim,),
                              minval=-k_emb, maxval=k_emb, dtype=jnp.float32)
    x = jax.random.normal(kx, (batch, in_dim), dtype=jnp.float32)

    out = mgradnet_m_forward(x, W, b, beta, alpha, bias)
    out = jax.block_until_ready(out)

    ref = mgradnet_m_reference(x, W, b, beta, alpha, bias)
    assert out.shape == (batch, in_dim)
    assert jnp.allclose(out, ref, atol=1e-5, rtol=1e-5), "mismatch vs reference"

    print("KERNEL_OK")
</pallas_src>

<mosaic_0001>
module attributes {stable_mosaic.version = 11 : i64} {
  func.func @_mgradnet_kernel(%arg0: i32, %arg1: memref<8x16xf32, #tpu.memory_space<vmem>>, %arg2: memref<16x128xf32, #tpu.memory_space<vmem>>, %arg3: memref<1x128xf32, #tpu.memory_space<vmem>>, %arg4: memref<128x16xf32, #tpu.memory_space<vmem>>, %arg5: memref<1x16xf32, #tpu.memory_space<vmem>>, %arg6: memref<8x16xf32, #tpu.memory_space<vmem>>) attributes {dimension_semantics = [#tpu.dimension_semantics<parallel>], iteration_bounds = array<i64: 1>, scalar_prefetch = 0 : i64, scratch_operands = 0 : i64, tpu.core_type = #tpu.core_type<tc>, window_params = [{transform_indices = @transform_0, window_bounds = array<i64: 8, 16>}, {pipeline_mode = #tpu.pipeline_mode<synchronous>, transform_indices = @transform_1, window_bounds = array<i64: 16, 128>}, {pipeline_mode = #tpu.pipeline_mode<synchronous>, transform_indices = @transform_2, window_bounds = array<i64: 1, 128>}, {pipeline_mode = #tpu.pipeline_mode<synchronous>, transform_indices = @transform_3, window_bounds = array<i64: 128, 16>}, {pipeline_mode = #tpu.pipeline_mode<synchronous>, transform_indices = @transform_4, window_bounds = array<i64: 1, 16>}, {transform_indices = @transform_5, window_bounds = array<i64: 8, 16>}]} {
    %c0 = arith.constant 0 : index
    %c0_0 = arith.constant 0 : index
    %0 = vector.load %arg2[%c0, %c0_0] : memref<16x128xf32, #tpu.memory_space<vmem>>, vector<16x128xf32>
    %c0_1 = arith.constant 0 : index
    %c0_2 = arith.constant 0 : index
    %1 = vector.load %arg4[%c0_1, %c0_2] : memref<128x16xf32, #tpu.memory_space<vmem>>, vector<128x16xf32>
    %c0_3 = arith.constant 0 : index
    %c0_4 = arith.constant 0 : index
    %2 = vector.load %arg3[%c0_3, %c0_4] : memref<1x128xf32, #tpu.memory_space<vmem>>, vector<1x128xf32>
    %3 = vector.shape_cast %2 : vector<1x128xf32> to vector<1x128xf32>
    %4 = vector.broadcast %3 : vector<1x128xf32> to vector<8x128xf32>
    %c0_5 = arith.constant 0 : index
    %c0_6 = arith.constant 0 : index
    %5 = vector.load %arg5[%c0_5, %c0_6] : memref<1x16xf32, #tpu.memory_space<vmem>>, vector<1x16xf32>
    %6 = vector.shape_cast %5 : vector<1x16xf32> to vector<1x16xf32>
    %7 = vector.broadcast %6 : vector<1x16xf32> to vector<8x16xf32>
    %c0_7 = arith.constant 0 : index
    %c0_8 = arith.constant 0 : index
    %8 = vector.load %arg1[%c0_7, %c0_8] : memref<8x16xf32, #tpu.memory_space<vmem>>, vector<8x16xf32>
    %cst = arith.constant dense<0.000000e+00> : vector<8x128xf32>
    %9 = tpu.matmul %8, %0, %cst {dimension_numbers = #tpu.dot_dimension_numbers<[1], [0], [0], [1], [0, 0, 1, 1], [], []>} : vector<8x16xf32>, vector<16x128xf32>, vector<8x128xf32> -> vector<8x128xf32>
    %10 = arith.addf %9, %4 : vector<8x128xf32>
    %11 = math.tanh %10 : vector<8x128xf32>
    %cst_9 = arith.constant dense<0.000000e+00> : vector<8x16xf32>
    %12 = tpu.matmul %11, %1, %cst_9 {dimension_numbers = #tpu.dot_dimension_numbers<[1], [0], [0], [1], [0, 0, 1, 1], [], []>} : vector<8x128xf32>, vector<128x16xf32>, vector<8x16xf32> -> vector<8x16xf32>
    %13 = arith.addf %12, %7 : vector<8x16xf32>
    %c0_10 = arith.constant 0 : index
    %c0_11 = arith.constant 0 : index
    %14 = vector.load %arg6[%c0_10, %c0_11] : memref<8x16xf32, #tpu.memory_space<vmem>>, vector<8x16xf32>
    tpu.vector_store %arg6[%c0_10, %c0_11], %13 {strides = array<i32>} : memref<8x16xf32, #tpu.memory_space<vmem>>, vector<8x16xf32>,
    return
  }
  func.func @transform_0(%arg0: i32) -> (i32, i32) {
    %c0_i32 = arith.constant 0 : i32
    %c0_i32_0 = arith.constant 0 : i32
    return %arg0, %c0_i32 : i32, i32
  }
  func.func @transform_1(%arg0: i32) -> (i32, i32) {
    %c0_i32 = arith.constant 0 : i32
    %c0_i32_0 = arith.constant 0 : i32
    %c0_i32_1 = arith.constant 0 : i32
    return %c0_i32, %c0_i32_0 : i32, i32
  }
  func.func @transform_2(%arg0: i32) -> (i32, i32) {
    %c0_i32 = arith.constant 0 : i32
    %c0_i32_0 = arith.constant 0 : i32
    %c0_i32_1 = arith.constant 0 : i32
    return %c0_i32, %c0_i32_0 : i32, i32
  }
  func.func @transform_3(%arg0: i32) -> (i32, i32) {
    %c0_i32 = arith.constant 0 : i32
    %c0_i32_0 = arith.constant 0 : i32
    %c0_i32_1 = arith.constant 0 : i32
    return %c0_i32, %c0_i32_0 : i32, i32
  }
  func.func @transform_4(%arg0: i32) -> (i32, i32) {
    %c0_i32 = arith.constant 0 : i32
    %c0_i32_0 = arith.constant 0 : i32
    %c0_i32_1 = arith.constant 0 : i32
    return %c0_i32, %c0_i32_0 : i32, i32
  }
  func.func @transform_5(%arg0: i32) -> (i32, i32) {
    %c0_i32 = arith.constant 0 : i32
    %c0_i32_0 = arith.constant 0 : i32
    return %arg0, %c0_i32 : i32, i32
  }
}

</mosaic_0001>

<bundles_post_ra>
// kernel: tpu_custom_call.1
= control target key start
LH: loop header
LB: loop body
LE: loop exit
PB: predicated region body
PF: predicated region fallthrough
CT: control target
= control target key end

     0   :  { %v336_v2 = vmov 0.0|0.0   ;;  %vm337_vm0 = vmmov 0   ;;  %v338_v4 = vmov 0.0   ;;  %vm54_vm1 = vcmask 130048   ;;  %s447_s0 = inlined_call_operand.vmem [shape: f32[8,16], index: 0, kind: input, shape index: {}]   ;;  %s448_s1 = inlined_call_operand.vmem [shape: f32[16,128], index: 1, kind: input, shape index: {}]   ;;  %s449_s2 = inlined_call_operand.vmem [shape: f32[1,128], index: 2, kind: input, shape index: {}]   ;;  %s450_s3 = inlined_call_operand.vmem [shape: f32[128,16], index: 3, kind: input, shape index: {}]   ;;  %s451_s4 = inlined_call_operand.vmem [shape: f32[1,16], index: 4, kind: input, shape index: {}]   ;;  %s452_s5 = inlined_call_operand.hbm [shape: f32[8,16], index: 5, kind: output, shape index: {}]  }
   0x1   :  { %v21_v0 = vld [vmem:[%s448_s1] sm:$0xff]  ;;  %v22_v1 = vld [vmem:[%s448_s1 + $0x8] sm:$0xff]  ;;  %279 = vmatprep.subr.bf16.mxu0 %v336_v2  ;;  %241 = vmatprep.mubr.msk.f32.mxu0 %vm337_vm0, %v338_v4  ;;  %v25_v7 = vld [vmem:[%s450_s3 + $0x10] sm:$0xff] }
   0x2   :  { %v280_v3 = vpack.c.bf16 %v22_v1, %v21_v0  ;;  %v23_v5 = vld [vmem:[%s450_s3] sm:$0xff]  ;;  %v24_v6 = vld [vmem:[%s450_s3 + $0x8] sm:$0xff]  ;;  %282 = vmatprep.subr.bf16.mxu1 %v336_v2  ;;  %v26_v9 = vld [vmem:[%s450_s3 + $0x18] sm:$0xff]  ;;  %276 = vmatprep.mubr.msk.f32.mxu1 %vm337_vm0, %v338_v4 }
   0x3   :  { %v283_v8 = vpack.c.bf16 %v24_v6, %v23_v5  ;;  %v53_v10 = vld [vmem:[%s447_s0] sm:$0xff]  ;;  %v286_v11 = vpack.c.bf16 %v26_v9, %v25_v7 }
   0x4   :  { %281 = vmatpush3.bf16.msra.mxu0 %v280_v3 }
   0x5   :  { %284 = vmatpush3.bf16.msra.mxu1 %v283_v8 }
   0x6   :  { %10 = vsyncpa [#allocation3], 0  ;;  %285 = vmatprep.subr.bf16.mxu1 %v336_v2  ;;  %v27_v12 = vld [vmem:[%s450_s3 + $0x20] sm:$0xff]  ;;  %v28_v13 = vld [vmem:[%s450_s3 + $0x28] sm:$0xff]  ;;  %s339_s7 = smov [#allocation2]  }
   0x7   :  { %242 = vmatmul.mubr.msk.f32.vlgmr.msra.gmra.mrb[0].mxu0 %vm54_vm1, %v53_v10  ;;  %v289_v14 = vpack.c.bf16 %v28_v13, %v27_v12  ;;  %v29_v15 = vld [vmem:[%s450_s3 + $0x30] sm:$0xff]  ;;  %v30_v16 = vld [vmem:[%s450_s3 + $0x38] sm:$0xff]  ;;  %v31_v18 = vld [vmem:[%s450_s3 + $0x40] sm:$0xff] }
   0x8   :  { %v292_v17 = vpack.c.bf16 %v30_v16, %v29_v15  ;;  %v32_v19 = vld [vmem:[%s450_s3 + $0x48] sm:$0xff]  ;;  %v33_v21 = vld [vmem:[%s450_s3 + $0x50] sm:$0xff]  ;;  %v34_v22 = vld [vmem:[%s450_s3 + $0x58] sm:$0xff] }
   0x9   :  { %287 = vmatpush3.bf16.msra.mxu1 %v286_v11  ;;  %v295_v20 = vpack.c.bf16 %v32_v19, %v31_v18  ;;  %v298_v23 = vpack.c.bf16 %v34_v22, %v33_v21  ;;  %v35_v24 = vld [vmem:[%s450_s3 + $0x60] sm:$0xff]  ;;  %v36_v25 = vld [vmem:[%s450_s3 + $0x68] sm:$0xff]  ;;  %v37_v27 = vld [vmem:[%s450_s3 + $0x70] sm:$0xff] }
   0xa   :  { %288 = vmatprep.subr.bf16.mxu1 %v336_v2  ;;  %v301_v26 = vpack.c.bf16 %v36_v25, %v35_v24  ;;  %v38_v28 = vld [vmem:[%s450_s3 + $0x78] sm:$0xff]  ;;  %v214_v30 = vld [vmem:[%s449_s2] ss:$0 sm:$0xff]  ;;  %s206_s3 = sshll.u32 %s339_s7, 4  ;;  %s207_s3 = int_to_ptr.vmem [resolvable:$true] %s206_s3 }
   0xb   :  { %v304_v29 = vpack.c.bf16 %v38_v28, %v37_v27  ;;  %v215_v35 = vld [vmem:[%s451_s4] ss:$0 sm:$0xff]  ;;  %s312_s8 = scalar_lea.vmem %s207_s3, 128  ;;  %p317_p1 = scmp.lt.s32.totalorder %s207_s3, %s207_s3 }
   0xc   :  { %p313_p0 = scmp.ne.s32.totalorder %s207_s3, %s312_s8  ;;  %p318_p2 = scmp.lt.s32.totalorder %s312_s8, %s312_s8 }
   0xd   :  { %290 = vmatpush3.bf16.msra.mxu1 %v289_v14 }
   0xe   :  { %291 = vmatprep.subr.bf16.mxu1 %v336_v2  ;;  %p319_p3 = por %p318_p2, %p317_p1 }
  0x10   :  { %p320_p4 = pnand %p319_p3, %p313_p0 }
  0x11   :  { %293 = vmatpush3.bf16.msra.mxu1 %v292_v17 }
  0x12   :  { %294 = vmatprep.subr.bf16.mxu1 %v336_v2 }
  0x15   :  { %296 = vmatpush3.bf16.msra.mxu1 %v295_v20 }
  0x16   :  { %297 = vmatprep.subr.bf16.mxu1 %v336_v2 }
  0x19   :  { %299 = vmatpush3.bf16.msra.mxu1 %v298_v23 }
  0x1a   :  { %300 = vmatprep.subr.bf16.mxu1 %v336_v2 }
  0x1d   :  { %302 = vmatpush3.bf16.msra.mxu1 %v301_v26 }
  0x1e   :  { %303 = vmatprep.subr.bf16.mxu1 %v336_v2 }
  0x21   :  { %305 = vmatpush3.bf16.msra.mxu1 %v304_v29 }
  0xda   :  { %v124_v31 = vpop.f32.mrb[0].mxu0 }
  0xdb   :  { %v125_v32 = vadd.f32 %v214_v30, %v124_v31  ;;  %v243_v33 = vpop.f32.mrb[1].mxu0 }
  0xdd   :  { %310 = vtanh.f32 %v125_v32 }
  0xe7   :  { %v311_v34 = vpop.eup %310 }
  0xe8   :  { %277 = vmatmul.mubr.f32.vlgmr.msra.gmra.mrb[0].mxu1 %v311_v34 }
 0x1bb   :  { %v195_v36 = vpop.f32.mrb[0].mxu1 }
 0x1bc   :  { %v196_v37 = vadd.f32 %v215_v35, %v195_v36  ;;  %v278_v38 = vpop.f32.mrb[1].mxu1 }
 0x1be   :  { %199 = vst.msk [vmem:[#allocation2] sm:$0xff] %vm54_vm1, %v196_v37 }
 0x1bf   :  { %323 = shalt.err (!%p320_p4)
}
 0x1c0   :  { %s324_s10 = scalar_lea.hbm %s452_s5, 128 }
 0x1c1   :  { %p325_p5 = scmp.ne.s32.totalorder %s452_s5, %s324_s10  ;;  %p328_p6 = scmp.lt.u32.totalorder %s324_s10, %s452_s5 }
 0x1c3   :  { %p330_p7 = pnand %p328_p6, %p325_p5 }
 0x1c5   :  { %333 = shalt.err (!%p330_p7)
}
 0x1c6   :  { %209 = dma.vmem_to_hbm [thread:$0]  %s207_s3, 128, %s452_s5, [#allocation3]  }
 0x1c7   :  { %334 = dma.done.wait [#allocation3], 128  }
 0x1c8   :  { %335 = vsyncadd [#allocation3], 4294967168 }
 0x1c9   :  { %213 = vsyncpa [#allocation3], 1 }

</bundles_post_ra>
